<compile_context>
chip_gen: v7x
topology: tpu7x:2x2x1
jax: 0.10.0
libtpu: 0.0.40
codegen_flags: <defaults>
</compile_context>

<pallas_src>
import functools

import numpy as np
import jax
import jax.numpy as jnp
from jax.experimental import pallas as pl
from jax.experimental.pallas import tpu as pltpu


def _round_up(x, m):
    return ((x + m - 1) // m) * m


# ----------------------------------------------------------------------------
# SAGEConv kernel (tiled over (row_tile, k_tile), f32 accumulator)
# ----------------------------------------------------------------------------
def _sage_kernel(a_ref, xk_ref, xi_ref, w_ref, b_ref, o_ref, acc_ref,
                 *, apply_relu):
    # PyG SAGEConv(aggr='mean'): out = (A_mean @ x) @ Wl + bl + x @ Wr
    @pl.when(pl.program_id(1) == 0)
    def _():
        acc_ref[...] = jnp.zeros_like(acc_ref)

    acc_ref[...] += jnp.dot(a_ref[...], xk_ref[...],
                            preferred_element_type=jnp.float32)

    @pl.when(pl.program_id(1) == pl.num_programs(1) - 1)
    def _():
        # single MXU matmul on [agg | x_root] against stacked [Wl; Wr]
        xc = jnp.concatenate([acc_ref[...], xi_ref[...]],
                             axis=-1).astype(jnp.bfloat16)
        y = jnp.dot(xc, w_ref[...], preferred_element_type=jnp.float32)
        y = y + b_ref[...]
        if apply_relu:
            y = jnp.maximum(y, 0.0)
        o_ref[...] = y


def sage_tiles(n, tm=512, tk=2048):
    tm = min(tm, _round_up(n, 8))
    tk = min(tk, _round_up(n, 128))
    return tm, tk


def pallas_sage_conv(a_p, n, x, wl, wr, bl, apply_relu, tm, tk):
    """a_p: pre-padded bf16 mean-aggregation matrix (reused across layers)."""
    f = x.shape[1]
    h = wl.shape[1]
    h_pad = _round_up(h, 128)
    n_r, n_c = a_p.shape

    xk = jnp.pad(x.astype(jnp.bfloat16), ((0, n_c - n), (0, 0)))
    xi = jnp.pad(x.astype(jnp.float32), ((0, n_r - n), (0, 0)))
    w = jnp.concatenate([wl, wr], axis=0)                       # (2f, h)
    w = jnp.pad(w, ((0, 0), (0, h_pad - h))).astype(jnp.bfloat16)
    b = jnp.pad(bl.reshape(1, h), ((0, 0), (0, h_pad - h))).astype(jnp.float32)

    out = pl.pallas_call(
        functools.partial(_sage_kernel, apply_relu=apply_relu),
        out_shape=jax.ShapeDtypeStruct((n_r, h_pad), jnp.float32),
        grid=(n_r // tm, n_c // tk),
        in_specs=[
            pl.BlockSpec((tm, tk), lambda i, k: (i, k)),    # A_mean tile (streamed)
            pl.BlockSpec((tk, f), lambda i, k: (k, 0)),     # x rows for aggregation
            pl.BlockSpec((tm, f), lambda i, k: (i, 0)),     # x rows for root term
            pl.BlockSpec((2 * f, h_pad), lambda i, k: (0, 0)),  # [Wl; Wr] resident
            pl.BlockSpec((1, h_pad), lambda i, k: (0, 0)),      # bias
        ],
        out_specs=pl.BlockSpec((tm, h_pad), lambda i, k: (i, 0)),
        scratch_shapes=[pltpu.VMEM((tm, f), jnp.float32)],
        compiler_params=pltpu.CompilerParams(
            dimension_semantics=("parallel", "arbitrary")),
    )(a_p, xk, xi, w, b)
    return out[:n, :h]


# ----------------------------------------------------------------------------
# Fused degree head + 3-layer FeatGenerator MLP (row-tiled, weights resident)
# ----------------------------------------------------------------------------
def _gen_deg_kernel(z_ref, noise_ref, regw_ref, regb_ref, w1_ref, b1_ref,
                    w2_ref, b2_ref, w3_ref, b3_ref, deg_ref, gen_ref):
    z = z_ref[...]
    zb = z.astype(jnp.bfloat16)
    deg = jnp.dot(zb, regw_ref[...], preferred_element_type=jnp.float32)
    deg_ref[...] = jnp.maximum(deg + regb_ref[...], 0.0)

    g = (z + noise_ref[...]).astype(jnp.bfloat16)               # Sampling()
    h = jnp.dot(g, w1_ref[...], preferred_element_type=jnp.float32) + b1_ref[...]
    h = jnp.maximum(h, 0.0).astype(jnp.bfloat16)
    h = jnp.dot(h, w2_ref[...], preferred_element_type=jnp.float32) + b2_ref[...]
    h = jnp.maximum(h, 0.0).astype(jnp.bfloat16)
    # TODO(synk): F.dropout is treated as identity (eval-mode forward).
    y = jnp.dot(h, w3_ref[...], preferred_element_type=jnp.float32) + b3_ref[...]
    gen_ref[...] = jnp.tanh(y)


def pallas_gen_and_degree(z, noise, reg_w, reg_b, fc1_w, fc1_b, fc2_w, fc2_b,
                          fcf_w, fcf_b, tm=256):
    n, g_dim = z.shape
    d1 = fc1_w.shape[1]
    d2 = fc2_w.shape[1]
    dout = fcf_w.shape[1]
    dout_pad = _round_up(dout, 128)
    tm = min(tm, _round_up(n, 8))
    n_pad = _round_up(n, tm)

    z_p = jnp.pad(z.astype(jnp.float32), ((0, n_pad - n), (0, 0)))
    noise_p = jnp.pad(noise.astype(jnp.float32), ((0, n_pad - n), (0, 0)))
    regw = jnp.pad(reg_w, ((0, 0), (0, 128 - reg_w.shape[1]))).astype(jnp.bfloat16)
    regb = reg_b.reshape(1, -1)
    regb = jnp.pad(regb, ((0, 0), (0, 128 - regb.shape[1]))).astype(jnp.float32)
    w3 = jnp.pad(fcf_w, ((0, 0), (0, dout_pad - dout))).astype(jnp.bfloat16)
    b3 = jnp.pad(fcf_b.reshape(1, -1),
                 ((0, 0), (0, dout_pad - dout))).astype(jnp.float32)

    deg_out, gen_out = pl.pallas_call(
        _gen_deg_kernel,
        out_shape=(jax.ShapeDtypeStruct((n_pad, 128), jnp.float32),
                   jax.ShapeDtypeStruct((n_pad, dout_pad), jnp.float32)),
        grid=(n_pad // tm,),
        in_specs=[
            pl.BlockSpec((tm, g_dim), lambda i: (i, 0)),
            pl.BlockSpec((tm, g_dim), lambda i: (i, 0)),
            pl.BlockSpec((g_dim, 128), lambda i: (0, 0)),
            pl.BlockSpec((1, 128), lambda i: (0, 0)),
            pl.BlockSpec((g_dim, d1), lambda i: (0, 0)),
            pl.BlockSpec((1, d1), lambda i: (0, 0)),
            pl.BlockSpec((d1, d2), lambda i: (0, 0)),
            pl.BlockSpec((1, d2), lambda i: (0, 0)),
            pl.BlockSpec((d2, dout_pad), lambda i: (0, 0)),
            pl.BlockSpec((1, dout_pad), lambda i: (0, 0)),
        ],
        out_specs=(pl.BlockSpec((tm, 128), lambda i: (i, 0)),
                   pl.BlockSpec((tm, dout_pad), lambda i: (i, 0))),
        compiler_params=pltpu.CompilerParams(dimension_semantics=("parallel",)),
    )(z_p, noise_p, regw, regb,
      fc1_w.astype(jnp.bfloat16), fc1_b.reshape(1, -1).astype(jnp.float32),
      fc2_w.astype(jnp.bfloat16), fc2_b.reshape(1, -1).astype(jnp.float32),
      w3, b3)
    return deg_out[:n, :1], gen_out[:n, :dout]


# ----------------------------------------------------------------------------
# CoLA GCN + PReLU + fused 'avg' readout (VPU bmm over S+1 slabs)
# ----------------------------------------------------------------------------
def _gcn_readout_kernel(feat_ref, adj_ref, w_ref, b_ref, alpha_ref,
                        hmv_ref, c_ref):
    s1 = feat_ref.shape[0]           # S + 1
    S = s1 - 1
    alpha = alpha_ref[...]           # (1, 1)
    bias = b_ref[...]                # (1, Hp)
    adj = adj_ref[...]               # (s1, tb, s1) f32

    # per-slab feature transform: (tb, Fin) @ (Fin, Hp)
    fts = [jnp.dot(feat_ref[j], w_ref[...], preferred_element_type=jnp.float32)
           for j in range(s1)]

    c_acc = jnp.zeros_like(fts[0])
    for i in range(s1):
        out_i = jnp.zeros_like(fts[0])
        for j in range(s1):                       # unrolled VPU MAC (tiny bmm)
            out_i = out_i + adj[i, :, j:j + 1] * fts[j]
        h_i = out_i + bias
        h_i = jnp.where(h_i >= 0.0, h_i, alpha * h_i)   # PReLU
        if i < S:
            c_acc = c_acc + h_i
        else:
            hmv_ref[...] = h_i
    c_ref[...] = c_acc * (1.0 / S)


def pallas_gcn_readout(feat_t, adj_t, w, b, alpha, tb=128):
    s1, B, Fin = feat_t.shape
    H = w.shape[1]
    h_pad = _round_up(H, 128)
    tb = min(tb, _round_up(B, 8))
    b_pad = _round_up(B, tb)

    feat_p = jnp.pad(feat_t.astype(jnp.bfloat16),
                     ((0, 0), (0, b_pad - B), (0, 0)))
    adj_p = jnp.pad(adj_t.astype(jnp.float32),
                    ((0, 0), (0, b_pad - B), (0, 0)))
    w_p = jnp.pad(w, ((0, 0), (0, h_pad - H))).astype(jnp.bfloat16)
    b_p = jnp.pad(b.reshape(1, -1), ((0, 0), (0, h_pad - H))).astype(jnp.float32)

    hmv, c = pl.pallas_call(
        _gcn_readout_kernel,
        out_shape=(jax.ShapeDtypeStruct((b_pad, h_pad), jnp.float32),
                   jax.ShapeDtypeStruct((b_pad, h_pad), jnp.float32)),
        grid=(b_pad // tb,),
        in_specs=[
            pl.BlockSpec((s1, tb, Fin), lambda i: (0, i, 0)),
            pl.BlockSpec((s1, tb, s1), lambda i: (0, i, 0)),
            pl.BlockSpec((Fin, h_pad), lambda i: (0, 0)),
            pl.BlockSpec((1, h_pad), lambda i: (0, 0)),
            pl.BlockSpec((1, 1), lambda i: (0, 0)),
        ],
        out_specs=(pl.BlockSpec((tb, h_pad), lambda i: (i, 0)),
                   pl.BlockSpec((tb, h_pad), lambda i: (i, 0))),
        compiler_params=pltpu.CompilerParams(dimension_semantics=("parallel",)),
    )(feat_p, adj_p, w_p, b_p, alpha.reshape(1, 1).astype(jnp.float32))
    return hmv[:B, :H], c[:B, :H]


# ----------------------------------------------------------------------------
# Discriminator: Bilinear(n_h, n_h, 1), row-tiled, single (tm, 2) store
# ----------------------------------------------------------------------------
def _disc_kernel(h_ref, c_ref, cmi_ref, w_ref, b_ref, o_ref):
    t = jnp.dot(h_ref[...], w_ref[...], preferred_element_type=jnp.float32)
    pos = jnp.sum(t * c_ref[...], axis=-1, keepdims=True) + b_ref[...]
    neg = jnp.sum(t * cmi_ref[...], axis=-1, keepdims=True) + b_ref[...]
    o_ref[...] = jnp.concatenate([pos, neg], axis=-1)


def pallas_discriminator(h, c, c_mi, w, b, tm=256):
    B, H = h.shape
    tm = min(tm, _round_up(B, 8))
    b_pad = _round_up(B, tm)
    pad = ((0, b_pad - B), (0, 0))
    out2 = pl.pallas_call(
        _disc_kernel,
        out_shape=jax.ShapeDtypeStruct((b_pad, 2), jnp.float32),
        grid=(b_pad // tm,),
        in_specs=[
            pl.BlockSpec((tm, H), lambda i: (i, 0)),
            pl.BlockSpec((tm, H), lambda i: (i, 0)),
            pl.BlockSpec((tm, H), lambda i: (i, 0)),
            pl.BlockSpec((H, H), lambda i: (0, 0)),
            pl.BlockSpec((1, 1), lambda i: (0, 0)),
        ],
        out_specs=pl.BlockSpec((tm, 2), lambda i: (i, 0)),
        compiler_params=pltpu.CompilerParams(dimension_semantics=("parallel",)),
    )(jnp.pad(h.astype(jnp.bfloat16), pad),
      jnp.pad(c.astype(jnp.float32), pad),
      jnp.pad(c_mi.astype(jnp.float32), pad),
      w.astype(jnp.bfloat16), b.reshape(1, 1).astype(jnp.float32))
    out2 = out2[:B]
    # reference layout: all positive scores first, then negative-sample scores
    return jnp.concatenate([out2[:, 0:1], out2[:, 1:2]], axis=0)


# ----------------------------------------------------------------------------
# Host-side glue (data-dependent / dynamic shapes)
# ----------------------------------------------------------------------------
def mean_agg_matrix(edge_index, num_nodes):
    # A_mean[t, s] = 1/deg_in(t) for edge s->t  (PyG SAGEConv 'mean' aggregation)
    A = np.zeros((num_nodes, num_nodes), np.float32)
    np.add.at(A, (edge_index[1], edge_index[0]), 1.0)
    deg = A.sum(1)
    deg = np.where(deg > 0, deg, 1.0)
    return (A / deg[:, None]).astype(np.float32)


def process_graph_np(feat, edge_index):
    # equivalent of process_graph(): D^-1/2-normalised dense adjacency + I
    # TODO(synk): adjacency sized by edge_index.max()+1 like the reference; can
    # be smaller than the mended feature count if generated nodes get no edges.
    M = int(edge_index.max()) + 1
    adj = np.zeros((M, M), dtype=np.float32)
    np.add.at(adj, (edge_index[0], edge_index[1]), 1.0)
    rowsum = adj.sum(1)
    with np.errstate(divide="ignore"):
        d_inv_sqrt = np.power(rowsum, -0.5)
    d_inv_sqrt[np.isinf(d_inv_sqrt)] = 0.0
    d_mat = np.diag(d_inv_sqrt).astype(np.float32)
    adj_n = (adj @ d_mat).T @ d_mat + np.eye(M, dtype=np.float32)
    return feat.astype(np.float32), adj_n.astype(np.float32)


def random_walk_np(row, col, nb_nodes, walk_length, seed=0):
    # TODO(synk): torch_cluster.random_walk has no Pallas equivalent; deterministic numpy walk.
    rng = np.random.default_rng(seed)
    max_idx = int(max(row.max(), col.max())) + 1 if row.size else nb_nodes
    neigh = [[] for _ in range(max(max_idx, nb_nodes))]
    for s, t in zip(row.tolist(), col.tolist()):
        neigh[int(s)].append(int(t))
    traces = []
    for start in range(nb_nodes):
        cur, tr = start, [start]
        for _ in range(walk_length):
            ns = neigh[cur]
            cur = cur if len(ns) == 0 else int(ns[rng.integers(len(ns))])
            tr.append(cur)
        traces.append(tr)
    return np.asarray(traces, np.int32)


def mend_graph_np(x_np, edge_index_np, degree_np, gen_feat_np, num_pred):
    # TODO(synk): graph mending is data-dependent dynamic-shape host glue.
    N, F = x_np.shape
    gen = gen_feat_np.reshape(-1, num_pred, F)
    fill_feats = np.vstack([x_np, gen.reshape(-1, F)]).astype(np.float32)
    pred_deg = np.round(degree_np).astype(np.int32).reshape(-1)
    new_edges = []
    for i in range(N):
        for j in range(min(num_pred, max(0, int(pred_deg[i])))):
            new_edges.append([i, N + i * num_pred + j])
    new_edges = np.asarray(new_edges, dtype=np.int64).reshape(-1, 2).T
    if new_edges.shape[1] > 0:
        fill_edges = np.hstack([edge_index_np, new_edges])
    else:
        fill_edges = edge_index_np.copy()
    return fill_feats, fill_edges


def build_cola_batch_device(x0_np, adj0_np, sub_np, S):
    """Device-side CoLA batch gather, already in the (S+1, B, *) layout the
    fused GCN/readout kernel consumes."""
    x0 = jnp.asarray(x0_np, jnp.float32)          # (Mx, Fin)
    adj0 = jnp.asarray(adj0_np, jnp.float32)      # (M, M)
    sub = jnp.asarray(sub_np, jnp.int32)          # (B, S)
    B = sub.shape[0]
    Fin = x0.shape[1]
    feat_walk = jnp.take(x0, sub, axis=0)         # (B, S, Fin)
    feat_t = jnp.concatenate([
        jnp.transpose(feat_walk[:, :S - 1, :], (1, 0, 2)),   # walk nodes 0..S-2
        jnp.zeros((1, B, Fin), jnp.float32),                 # anonymised row
        jnp.transpose(feat_walk[:, S - 1:S, :], (1, 0, 2)),  # last walk node
    ], axis=0)                                               # (S+1, B, Fin)
    adj_sub = adj0[sub[:, :, None], sub[:, None, :]]         # (B, S, S)
    adj_t = jnp.zeros((S + 1, B, S + 1), jnp.float32)
    adj_t = adj_t.at[:S, :, :S].set(jnp.transpose(adj_sub, (1, 0, 2)))
    adj_t = adj_t.at[S, :, S].set(1.0)
    return feat_t, adj_t


# ----------------------------------------------------------------------------
# Parameters (deterministic synthetic initialisation)
# ----------------------------------------------------------------------------
def init_params(key, cfg):
    Fin, H, G = cfg["in_channels"], cfg["hidden"], cfg["gen_hidden"]
    npred = cfg["num_pred"]
    ks = jax.random.split(key, 12)

    def glorot(k, shape):
        lim = float(np.sqrt(6.0 / (shape[0] + shape[1])))
        return jax.random.uniform(k, shape, jnp.float32, -lim, lim)

    p = {}
    # SAGE_Net (2-layer SAGEConv encoder)
    p["sage1_wl"] = glorot(ks[0], (Fin, H))
    p["sage1_wr"] = glorot(ks[1], (Fin, H))
    p["sage1_bl"] = jnp.zeros((H,), jnp.float32)
    p["sage2_wl"] = glorot(ks[2], (H, G))
    p["sage2_wr"] = glorot(ks[3], (H, G))
    p["sage2_bl"] = jnp.zeros((G,), jnp.float32)
    # NumPredictor
    p["reg_w"] = glorot(ks[4], (G, 1))
    p["reg_b"] = jnp.ones((1,), jnp.float32)  # bias 1.0 so rounded degrees > 0
    # FeatGenerator
    p["fc1_w"] = glorot(ks[5], (G, 256))
    p["fc1_b"] = jnp.zeros((256,), jnp.float32)
    p["fc2_w"] = glorot(ks[6], (256, 2048))
    p["fc2_b"] = jnp.zeros((2048,), jnp.float32)
    p["fcf_w"] = glorot(ks[7], (2048, npred * Fin))
    p["fcf_b"] = jnp.zeros((npred * Fin,), jnp.float32)
    # CoLA GCN + PReLU
    p["gcn_w"] = glorot(ks[8], (Fin, H))
    p["gcn_b"] = jnp.zeros((H,), jnp.float32)
    p["prelu_alpha"] = jnp.full((1, 1), 0.25, jnp.float32)
    # Discriminator (Bilinear(H, H, 1), xavier weight, zero bias)
    p["disc_w"] = glorot(ks[9], (H, H))
    p["disc_b"] = jnp.zeros((1,), jnp.float32)
    return p


# ----------------------------------------------------------------------------
# Full forward pass (FedSage_Plus_gad.forward)
# ----------------------------------------------------------------------------
def fedsage_plus_gad_forward(params, x_np, edge_index_np, cfg, noise_key):
    N, Fin = x_np.shape
    num_pred = cfg["num_pred"]
    S = cfg["subgraph_size"]
    assert cfg["negsamp_ratio"] == 1

    # ---- encoder_model: 2-layer GraphSAGE ------------------------------------
    # Build the bf16 padded mean-aggregation matrix ONCE and reuse it.
    a_mean_np = mean_agg_matrix(edge_index_np, N)
    tm_s, tk_s = sage_tiles(N)
    n_r, n_c = _round_up(N, tm_s), _round_up(N, tk_s)
    a_p = jnp.pad(jnp.asarray(a_mean_np).astype(jnp.bfloat16),
                  ((0, n_r - N), (0, n_c - N)))

    xj = jnp.asarray(x_np, jnp.float32)
    h1 = pallas_sage_conv(a_p, N, xj, params["sage1_wl"], params["sage1_wr"],
                          params["sage1_bl"], True, tm_s, tk_s)
    z = pallas_sage_conv(a_p, N, h1, params["sage2_wl"], params["sage2_wr"],
                         params["sage2_bl"], False, tm_s, tk_s)

    # ---- reg_model + gen: fused degree head + FeatGenerator MLP --------------
    noise = jax.random.normal(noise_key, z.shape, jnp.float32)  # Sampling()
    degree, gen_feat = pallas_gen_and_degree(
        z, noise, params["reg_w"], params["reg_b"],
        params["fc1_w"], params["fc1_b"], params["fc2_w"], params["fc2_b"],
        params["fcf_w"], params["fcf_b"])

    # ---- MendGraph + process_graph + random walks (host glue) ----------------
    degree_np = np.asarray(jax.device_get(degree))
    gen_np = np.asarray(jax.device_get(gen_feat))
    fill_feats, fill_edges = mend_graph_np(x_np, edge_index_np, degree_np,
                                           gen_np, num_pred)
    mend_x, mend_adj = process_graph_np(fill_feats, fill_edges)
    sub_np = random_walk_np(fill_edges[0], fill_edges[1], N,
                            walk_length=S - 1, seed=0)            # (B, S)

    # ---- CoLA batch construction (device-side gathers) ------------------------
    feat_t, adj_t = build_cola_batch_device(mend_x, mend_adj, sub_np, S)

    # ---- GCN + PReLU + fused 'avg' readout (Pallas) ---------------------------
    h_mv, c = pallas_gcn_readout(feat_t, adj_t, params["gcn_w"],
                                 params["gcn_b"], params["prelu_alpha"])

    # ---- discriminator ---------------------------------------------------------
    c_mi = jnp.concatenate([c[-2:-1, :], c[:-1, :]], axis=0)  # negsamp shift
    logits = pallas_discriminator(h_mv, c, c_mi, params["disc_w"],
                                  params["disc_b"])

    return degree, gen_feat, logits[:N]


# ----------------------------------------------------------------------------
if __name__ == "__main__":
    cfg = dict(in_channels=16, hidden=32, gen_hidden=32, num_pred=2,
               negsamp_ratio=1, subgraph_size=4, readout="avg")
    N = 8

    key = jax.random.PRNGKey(0)
    k_feat, k_noise, k_params = jax.random.split(key, 3)

    x = np.asarray(jax.random.normal(k_feat, (N, cfg["in_channels"]),
                                     jnp.float32))
    # bidirectional ring graph
    src = np.arange(N)
    dst = (src + 1) % N
    edge_index = np.stack([np.concatenate([src, dst]),
                           np.concatenate([dst, src])]).astype(np.int64)

    params = init_params(k_params, cfg)

    degree, gen_feat, logits = fedsage_plus_gad_forward(
        params, x, edge_index, cfg, k_noise)
    jax.block_until_ready((degree, gen_feat, logits))

    assert degree.shape == (N, 1)
    assert gen_feat.shape == (N, cfg["num_pred"] * cfg["in_channels"])
    assert logits.shape == (N, 1)
    assert np.all(np.isfinite(np.asarray(degree)))
    assert np.all(np.isfinite(np.asarray(gen_feat)))
    assert np.all(np.isfinite(np.asarray(logits)))
    print("KERNEL_OK")
</pallas_src>

<mosaic_0001>
module attributes {stable_mosaic.version = 11 : i64} {
  func.func @_sage_kernel(%arg0: i32, %arg1: i32, %arg2: memref<8x128xbf16, #tpu.memory_space<vmem>>, %arg3: memref<128x16xbf16, #tpu.memory_space<vmem>>, %arg4: memref<8x16xf32, #tpu.memory_space<vmem>>, %arg5: memref<32x128xbf16, #tpu.memory_space<vmem>>, %arg6: memref<1x128xf32, #tpu.memory_space<vmem>>, %arg7: memref<8x128xf32, #tpu.memory_space<vmem>>, %arg8: memref<8x16xf32, #tpu.memory_space<vmem>>) attributes {dimension_semantics = [#tpu.dimension_semantics<parallel>, #tpu.dimension_semantics<arbitrary>], iteration_bounds = array<i64: 1, 1>, scalar_prefetch = 0 : i64, scratch_operands = 1 : i64, tpu.core_type = #tpu.core_type<tc>, window_params = [{transform_indices = @transform_0, window_bounds = array<i64: 8, 128>}, {transform_indices = @transform_1, window_bounds = array<i64: 128, 16>}, {transform_indices = @transform_2, window_bounds = array<i64: 8, 16>}, {pipeline_mode = #tpu.pipeline_mode<synchronous>, transform_indices = @transform_3, window_bounds = array<i64: 32, 128>}, {pipeline_mode = #tpu.pipeline_mode<synchronous>, transform_indices = @transform_4, window_bounds = array<i64: 1, 128>}, {transform_indices = @transform_5, window_bounds = array<i64: 8, 128>}]} {
    %c0_i32 = arith.constant 0 : i32
    %0 = arith.cmpi eq, %arg1, %c0_i32 : i32
    %1 = arith.extui %0 : i1 to i32
    %c0_i32_0 = arith.constant 0 : i32
    %2 = arith.cmpi ne, %1, %c0_i32_0 : i32
    scf.if %2 {
      %cst_10 = arith.constant 0.000000e+00 : f32
      %12 = vector.broadcast %cst_10 : f32 to vector<8x16xf32>
      %c0_11 = arith.constant 0 : index
      %c0_12 = arith.constant 0 : index
      %13 = vector.load %arg8[%c0_11, %c0_12] : memref<8x16xf32, #tpu.memory_space<vmem>>, vector<8x16xf32>
      tpu.vector_store %arg8[%c0_11, %c0_12], %12 {strides = array<i32>} : memref<8x16xf32, #tpu.memory_space<vmem>>, vector<8x16xf32>,
    } else {
    }
    %c0 = arith.constant 0 : index
    %c0_1 = arith.constant 0 : index
    %3 = vector.load %arg8[%c0, %c0_1] : memref<8x16xf32, #tpu.memory_space<vmem>>, vector<8x16xf32>
    %c0_2 = arith.constant 0 : index
    %c0_3 = arith.constant 0 : index
    %4 = vector.load %arg2[%c0_2, %c0_3] : memref<8x128xbf16, #tpu.memory_space<vmem>>, vector<8x128xbf16>
    %c0_4 = arith.constant 0 : index
    %c0_5 = arith.constant 0 : index
    %5 = vector.load %arg3[%c0_4, %c0_5] : memref<128x16xbf16, #tpu.memory_space<vmem>>, vector<128x16xbf16>
    %cst = arith.constant dense<0.000000e+00> : vector<8x16xf32>
    %6 = tpu.matmul %4, %5, %cst {dimension_numbers = #tpu.dot_dimension_numbers<[1], [0], [0], [1], [0, 0, 1, 1], [], []>} : vector<8x128xbf16>, vector<128x16xbf16>, vector<8x16xf32> -> vector<8x16xf32>
    %7 = arith.addf %3, %6 : vector<8x16xf32>
    %c0_6 = arith.constant 0 : index
    %c0_7 = arith.constant 0 : index
    %8 = vector.load %arg8[%c0_6, %c0_7] : memref<8x16xf32, #tpu.memory_space<vmem>>, vector<8x16xf32>
    tpu.vector_store %arg8[%c0_6, %c0_7], %7 {strides = array<i32>} : memref<8x16xf32, #tpu.memory_space<vmem>>, vector<8x16xf32>,
    %c0_i32_8 = arith.constant 0 : i32
    %9 = arith.cmpi eq, %arg1, %c0_i32_8 : i32
    %10 = arith.extui %9 : i1 to i32
    %c0_i32_9 = arith.constant 0 : i32
    %11 = arith.cmpi ne, %10, %c0_i32_9 : i32
    scf.if %11 {
      %c0_10 = arith.constant 0 : index
      %c0_11 = arith.constant 0 : index
      %12 = vector.load %arg8[%c0_10, %c0_11] : memref<8x16xf32, #tpu.memory_space<vmem>>, vector<8x16xf32>
      %c0_12 = arith.constant 0 : index
      %c0_13 = arith.constant 0 : index
      %13 = vector.load %arg4[%c0_12, %c0_13] : memref<8x16xf32, #tpu.memory_space<vmem>>, vector<8x16xf32>
      %14 = tpu.concatenate %12, %13 in 1 : vector<8x16xf32>, vector<8x16xf32> -> vector<8x32xf32>
      %15 = arith.truncf %14 : vector<8x32xf32> to vector<8x32xbf16>
      %c0_14 = arith.constant 0 : index
      %c0_15 = arith.constant 0 : index
      %16 = vector.load %arg5[%c0_14, %c0_15] : memref<32x128xbf16, #tpu.memory_space<vmem>>, vector<32x128xbf16>
      %cst_16 = arith.constant dense<0.000000e+00> : vector<8x128xf32>
      %17 = tpu.matmul %15, %16, %cst_16 {dimension_numbers = #tpu.dot_dimension_numbers<[1], [0], [0], [1], [0, 0, 1, 1], [], []>} : vector<8x32xbf16>, vector<32x128xbf16>, vector<8x128xf32> -> vector<8x128xf32>
      %c0_17 = arith.constant 0 : index
      %c0_18 = arith.constant 0 : index
      %18 = vector.load %arg6[%c0_17, %c0_18] : memref<1x128xf32, #tpu.memory_space<vmem>>, vector<1x128xf32>
      %19 = vector.broadcast %18 : vector<1x128xf32> to vector<8x128xf32>
      %20 = arith.addf %17, %19 : vector<8x128xf32>
      %cst_19 = arith.constant 0.000000e+00 : f32
      %21 = vector.broadcast %cst_19 : f32 to vector<8x128xf32>
      %22 = arith.maximumf %20, %21 : vector<8x128xf32>
      %c0_20 = arith.constant 0 : index
      %c0_21 = arith.constant 0 : index
      %23 = vector.load %arg7[%c0_20, %c0_21] : memref<8x128xf32, #tpu.memory_space<vmem>>, vector<8x128xf32>
      tpu.vector_store %arg7[%c0_20, %c0_21], %22 {strides = array<i32>} : memref<8x128xf32, #tpu.memory_space<vmem>>, vector<8x128xf32>,
    } else {
    }
    return
  }
  func.func @transform_0(%arg0: i32, %arg1: i32) -> (i32, i32) {
    %c0_i32 = arith.constant 0 : i32
    return %arg0, %arg1 : i32, i32
  }
  func.func @transform_1(%arg0: i32, %arg1: i32) -> (i32, i32) {
    %c0_i32 = arith.constant 0 : i32
    %c0_i32_0 = arith.constant 0 : i32
    return %arg1, %c0_i32 : i32, i32
  }
  func.func @transform_2(%arg0: i32, %arg1: i32) -> (i32, i32) {
    %c0_i32 = arith.constant 0 : i32
    %c0_i32_0 = arith.constant 0 : i32
    return %arg0, %c0_i32 : i32, i32
  }
  func.func @transform_3(%arg0: i32, %arg1: i32) -> (i32, i32) {
    %c0_i32 = arith.constant 0 : i32
    %c0_i32_0 = arith.constant 0 : i32
    %c0_i32_1 = arith.constant 0 : i32
    return %c0_i32, %c0_i32_0 : i32, i32
  }
  func.func @transform_4(%arg0: i32, %arg1: i32) -> (i32, i32) {
    %c0_i32 = arith.constant 0 : i32
    %c0_i32_0 = arith.constant 0 : i32
    %c0_i32_1 = arith.constant 0 : i32
    return %c0_i32, %c0_i32_0 : i32, i32
  }
  func.func @transform_5(%arg0: i32, %arg1: i32) -> (i32, i32) {
    %c0_i32 = arith.constant 0 : i32
    %c0_i32_0 = arith.constant 0 : i32
    return %arg0, %c0_i32 : i32, i32
  }
}

</mosaic_0001>

<bundles_post_ra>
// kernel: tpu_custom_call.1
= control target key start
LH: loop header
LB: loop body
LE: loop exit
PB: predicated region body
PF: predicated region fallthrough
CT: control target
= control target key end

     0   :  { %v321_v1 = vmov 0.0   ;;  %vm322_vm0 = vmmov 0   ;;  %vm26_vm1 = vcmask 130048   ;;  %s323_s26 = smov 16   ;;  %s409_s0 = inlined_call_operand.vmem [shape: bf16[8,128], index: 0, kind: input, shape index: {}]   ;;  %s410_s1 = inlined_call_operand.vmem [shape: bf16[128,16], index: 1, kind: input, shape index: {}]   ;;  %s411_s2 = inlined_call_operand.vmem [shape: f32[8,16], index: 2, kind: input, shape index: {}]   ;;  %s412_s3 = inlined_call_operand.vmem [shape: bf16[32,128], index: 3, kind: input, shape index: {}]   ;;  %s413_s4 = inlined_call_operand.vmem [shape: f32[1,128], index: 4, kind: input, shape index: {}]   ;;  %s414_s5 = inlined_call_operand.hbm [shape: f32[8,128], index: 5, kind: output, shape index: {}]  }
   0x1   :  { %v287_v0 = vld [vmem:[%s410_s1] sm:$0xff]   ;;  %255 = vmatprep.subr.bf16.mxu0 %v321_v1  ;;  %275 = vmatprep.subr.bf16.mxu1 %v321_v1  ;;  %v288_v2 = vld [vmem:[%s410_s1 + $0x8] sm:$0xff]   ;;  %27 = vst.msk [vmem:[#allocation2] sm:$0xff] %vm26_vm1, %v321_v1  ;;  %v289_v3 = vld [vmem:[%s410_s1 + $0x10] sm:$0xff]  }
   0x2   :  { %256 = vmatpush3.bf16.msra.mxu0 %v287_v0  ;;  %271 = vmatprep.mubr.msk.bf16.mxu0 %vm322_vm0, %v321_v1  ;;  %v141_v4 = vld [vmem:[%s411_s2] sm:$0xff]  ;;  %v290_v5 = vld [vmem:[%s410_s1 + $0x18] sm:$0xff]  }
   0x3   :  { %257 = vmatprep.subr.bf16.mxu0 %v321_v1  ;;  %279 = vmatprep.mubr.msk.bf16.mxu1 %vm322_vm0, %v321_v1 }
   0x4   :  { %143 = vrot.lane.b32.xlu0 %v141_v4, %s323_s26 }
   0x6   :  { %258 = vmatpush3.bf16.msra.mxu0 %v288_v2 }
   0x7   :  { %259 = vmatprep.subr.bf16.mxu0 %v321_v1 }
   0xa   :  { %260 = vmatpush3.bf16.msra.mxu0 %v289_v3 }
   0xb   :  { %10 = vsyncpa [#allocation4], 0  ;;  %261 = vmatprep.subr.bf16.mxu0 %v321_v1  ;;  %v291_v6 = vld [vmem:[%s410_s1 + $0x20] sm:$0xff]   ;;  %v292_v7 = vld [vmem:[%s410_s1 + $0x28] sm:$0xff]   ;;  %vm171_vm2 = vcmask 261120  }
   0xc   :  { %v293_v8 = vld [vmem:[%s410_s1 + $0x30] sm:$0xff]   ;;  %v294_v9 = vld [vmem:[%s410_s1 + $0x38] sm:$0xff]   ;;  %v29_v10 = vld [vmem:[%s409_s0] sm:$0xf] }
   0xd   :  { %v295_v11 = vld [vmem:[%s412_s3] sm:$0xff]   ;;  %v296_v12 = vld [vmem:[%s412_s3 + $0x8] sm:$0xff]   ;;  %s324_s3 = smov [#allocation3]  }
   0xe   :  { %262 = vmatpush3.bf16.msra.mxu0 %v290_v5  ;;  %276 = vmatpush3.bf16.msra.mxu1 %v295_v11  ;;  %v28_v13 = vld [vmem:[#allocation2] sm:$0xff]  ;;  %s223_s17 = sshll.u32 %s324_s3, 4  ;;  %s224_s17 = int_to_ptr.vmem [resolvable:$true] %s223_s17 }
   0xf   :  { %263 = vmatprep.subr.bf16.mxu0 %v321_v1  ;;  %277 = vmatprep.subr.bf16.mxu1 %v321_v1  ;;  %v239_v23 = vld [vmem:[%s413_s4] ss:$0 sm:$0xff]  ;;  %s297_s18 = scalar_lea.vmem %s224_s17, 128  ;;  %p302_p1 = scmp.lt.s32.totalorder %s224_s17, %s224_s17 }
  0x10   :  { %p298_p0 = scmp.ne.s32.totalorder %s224_s17, %s297_s18  ;;  %p303_p2 = scmp.lt.s32.totalorder %s297_s18, %s297_s18 }
  0x12   :  { %264 = vmatpush3.bf16.msra.mxu0 %v291_v6  ;;  %278 = vmatpush3.bf16.msra.mxu1 %v296_v12  ;;  %p304_p3 = por %p303_p2, %p302_p1 }
  0x13   :  { %265 = vmatprep.subr.bf16.mxu0 %v321_v1 }
  0x14   :  { %p305_p4 = pnand %p304_p3, %p298_p0 }
  0x16   :  { %266 = vmatpush3.bf16.msra.mxu0 %v292_v7 }
  0x17   :  { %267 = vmatprep.subr.bf16.mxu0 %v321_v1 }
  0x1a   :  { %268 = vmatpush3.bf16.msra.mxu0 %v293_v8 }
  0x1b   :  { %269 = vmatprep.subr.bf16.mxu0 %v321_v1 }
  0x1e   :  { %270 = vmatpush3.bf16.msra.mxu0 %v294_v9 }
  0x21   :  { %272 = vmatmul.mubr.bf16.vlgmr.msra.gmra.mrb[0].mxu0 %v29_v10 }
  0x76   :  { %v144_v19 = vpop.permute.xlu0 %143 }
  0xf4   :  { %v128_v14 = vpop.f32.mrb[0].mxu0 }
  0xf5   :  { %v134_v15 = vadd.f32 %v128_v14, %v28_v13  ;;  %v273_v16 = vpop.f32.mrb[1].mxu0 }
  0xf6   :  { %v131_v17 = vpop.f32.mrb[2].mxu0 }
  0xf7   :  { %136 = vst.msk [vmem:[#allocation2] sm:$0xff] %vm26_vm1, %v134_v15  ;;  %v274_v18 = vpop.f32.mrb[3].mxu0 }
  0xfe   :  { %v140_v20 = vld [vmem:[#allocation2] sm:$0xff] }
  0xff   :  { %v146_v21 = vsel %vm26_vm1, %v140_v20, %v144_v19 }
 0x100   :  { %v147_v22 = vpack.c.bf16 %v146_v21, %v146_v21 }
 0x102   :  { %280 = vmatmul.mubr.msk.bf16.vlgmr.msra.gmra.mrb[0].mxu1 %vm171_vm2, %v147_v22 }
 0x1d5   :  { %v209_v24 = vpop.f32.mrb[0].mxu1 }
 0x1d6   :  { %v210_v25 = vadd.f32 %v239_v23, %v209_v24  ;;  %v281_v26 = vpop.f32.mrb[1].mxu1 }
 0x1d7   :  { %v212_v27 = vpop.f32.mrb[2].mxu1 }
 0x1d8   :  { %v215_v28 = vmax.f32 %v210_v25, 0.0  ;;  %v282_v29 = vpop.f32.mrb[3].mxu1 }
 0x1da   :  { %216 = vst [vmem:[#allocation3] sm:$0xff] %v215_v28 }
 0x1db   :  { %308 = shalt.err (!%p305_p4)
}
 0x1dc   :  { %s309_s4 = scalar_lea.hbm %s414_s5, 128 }
 0x1dd   :  { %p310_p5 = scmp.ne.s32.totalorder %s414_s5, %s309_s4  ;;  %p313_p6 = scmp.lt.u32.totalorder %s309_s4, %s414_s5 }
 0x1df   :  { %p315_p7 = pnand %p313_p6, %p310_p5 }
 0x1e1   :  { %318 = shalt.err (!%p315_p7)
}
 0x1e2   :  { %226 = dma.vmem_to_hbm [thread:$0]  %s224_s17, 128, %s414_s5, [#allocation4]  }
 0x1e3   :  { %319 = dma.done.wait [#allocation4], 128  }
 0x1e4   :  { %320 = vsyncadd [#allocation4], 4294967168 }
 0x1e5   :  { %230 = vsyncpa [#allocation4], 1 }

</bundles_post_ra>
